<compile_context>
chip_gen: v5e
topology: v5e:2x2
jax: 0.10.0
libtpu: 0.0.40
codegen_flags: <defaults>
</compile_context>

<pallas_src>
import numpy as np
import jax
import jax.numpy as jnp
from jax import lax
from jax.experimental import pallas as pl
from jax.experimental.pallas import tpu as pltpu

C_IN = 256   # in_channels of conv1/conv2
C_MID = 32   # out_channels of conv1/conv2/conv3
POOL = 8     # avg-pool kernel/stride


def global_qmg_pallas(E, v, params, *, matmul_dtype=jnp.bfloat16,
                      vmem_limit_bytes=48 * 1024 * 1024):
    """E: (B,1,H,W) NCHW; v: (B,256,H//8,W//8) NCHW.  Returns (B,1,H//8,W//8).

    matmul_dtype is the MXU operand dtype for the two length-N passes over V
    (bfloat16 by default; all accumulation stays float32)."""
    w1, b1, w2, b2, w3, b3, w5, b5, gamma, beta, rmean, rvar = params
    B, cE, H, W = E.shape
    assert cE == 1 and H % POOL == 0 and W % POOL == 0, "E must be (B,1,8k,8m)"
    hp, wp = H // POOL, W // POOL
    N = hp * wp
    assert v.shape == (B, C_IN, hp, wp)

    # ---- conv3 + 8x8 avg-pool + flatten, hoisted to XLA (per perf review) -------------
    # conv3 is a 1x1 affine map and commutes with the average pool; only the pooled E is
    # needed because E_tilde's rank-2 structure is exploited inside the kernel.
    avgE = E.astype(jnp.float32).reshape(B, hp, POOL, wp, POOL).mean(axis=(2, 4))
    avgE = avgE.reshape(B, N)                                        # row-major == V flatten
    lhs2 = jnp.stack([avgE, jnp.ones((B, N), jnp.float32)], axis=1)  # (B, 2, N)

    vflat = v.reshape(B, C_IN, N).astype(matmul_dtype)               # (B, 256, N)

    # ---- fold BatchNorm (inference) into the conv5 taps --------------------------------
    eps = 1e-5
    bn_scale = gamma[0] / jnp.sqrt(rvar[0] + eps)
    w5_taps = (w5[0] * bn_scale).transpose(1, 2, 0).reshape(9, C_MID)  # [t = ky*3+kx, c]
    b5_eff = ((b5[0] - rmean[0]) * bn_scale + beta[0]).reshape(1, 1)

    # ---- tiny structural helper: flattened (row, col) per output position --------------
    nn_idx = np.arange(N, dtype=np.int32)
    coords = jnp.asarray(np.stack([nn_idx // wp, nn_idx % wp], axis=0).astype(np.int32))

    def kernel(lhs_ref, v_ref, w1_ref, b1_ref, w2_ref, b2_ref, w3_ref, b3_ref,
               w5t_ref, b5_ref, coords_ref, out_ref):
        f32 = jnp.float32
        V = v_ref[0]                       # (256, N)  matmul_dtype
        cdt = V.dtype
        L = lhs_ref[0]                     # (2, N) f32: row 0 = avgE, row 1 = ones

        sumE = jnp.sum(L[0:1, :], axis=1, keepdims=True)                        # (1, 1)

        # -- one stacked MXU pass over V: rows give  avgE @ V^T  and  1 @ V^T ------------
        nt = (((1,), (1,)), ((), ()))      # contract both last dims: A @ B^T
        RV = lax.dot_general(L.astype(cdt), V, nt, preferred_element_type=f32)  # (2, 256)
        aVt, sVt = RV[0:1, :], RV[1:2, :]

        # -- rank-2 collapse of  M = E_tilde @ v1^T  (32x32; conv1 never materialized) ---
        r1 = lax.dot_general(aVt, w1_ref[...], nt, preferred_element_type=f32) \
            + sumE * b1_ref[...]                                                # (1, 32)
        r0 = lax.dot_general(sVt, w1_ref[...], nt, preferred_element_type=f32) \
            + float(N) * b1_ref[...]                                            # (1, 32)
        M = w3_ref[...] * r1 + b3_ref[...] * r0                                 # (32, 32)

        # -- fold conv2 AND conv5 channel taps: one (9,256)x(256,N) MXU pass over V ------
        w5M = jnp.dot(w5t_ref[...], M, preferred_element_type=f32)              # (9, 32)
        Ueff = jnp.dot(w5M, w2_ref[...], preferred_element_type=f32)            # (9, 256)
        ubias = jnp.dot(w5M, b2_ref[...], preferred_element_type=f32)           # (9, 1)
        U = jnp.dot(Ueff.astype(cdt), V, preferred_element_type=f32) + ubias    # (9, N)

        # -- conv5 3x3 spatial combine: dense pre-mask + 9 static XLU lane rolls ---------
        # U[t, n] is tap t's contribution sourced at flat position n; it feeds output
        # position n - shift_t (shift_t = dy*wp + dx).  Zero it unless that output is in
        # range for this tap, then rotate it into place and accumulate.
        tap = lax.broadcasted_iota(jnp.int32, (9, N), 0)
        dy = jnp.where(tap < 3, -1, jnp.where(tap < 6, 0, 1))                   # tap//3 - 1
        dx = tap - 3 * (dy + 1) - 1                                             # tap% 3 - 1
        yy = jnp.broadcast_to(coords_ref[0:1, :], (9, N))
        xx = jnp.broadcast_to(coords_ref[1:2, :], (9, N))
        oy, ox = yy - dy, xx - dx          # output (row, col) this source element feeds
        valid = (oy >= 0) & (oy < hp) & (ox >= 0) & (ox < wp)
        Wm = jnp.where(valid, U, 0.0)                                           # (9, N)

        acc = jnp.broadcast_to(b5_ref[...], (1, N))          # BN-folded conv5 bias
        for t in range(9):
            shift_t = (t // 3 - 1) * wp + (t % 3 - 1)
            row = Wm[t:t + 1, :]
            sh = (-shift_t) % N            # np.roll convention: out[m] = in[(m - sh) % N]
            if sh:
                row = pltpu.roll(row, shift=sh, axis=1)
            acc = acc + row
        out_ref[0] = jnp.maximum(acc, 0.0)                                      # ReLU

    def const_spec(shape):
        nd = len(shape)
        return pl.BlockSpec(shape, lambda b: (0,) * nd)

    out = pl.pallas_call(
        kernel,
        out_shape=jax.ShapeDtypeStruct((B, 1, N), jnp.float32),
        grid_spec=pltpu.PrefetchScalarGridSpec(
            num_scalar_prefetch=0,
            grid=(B,),
            in_specs=[
                pl.BlockSpec((1, 2, N), lambda b: (b, 0, 0)),        # [avgE; ones]
                pl.BlockSpec((1, C_IN, N), lambda b: (b, 0, 0)),     # V
                const_spec((C_MID, C_IN)), const_spec((1, C_MID)),   # conv1 w, b
                const_spec((C_MID, C_IN)), const_spec((C_MID, 1)),   # conv2 w, b
                const_spec((C_MID, 1)), const_spec((C_MID, 1)),      # conv3 w, b
                const_spec((9, C_MID)), const_spec((1, 1)),          # conv5 taps/bias (BN folded)
                const_spec((2, N)),                                  # coords helper
            ],
            out_specs=pl.BlockSpec((1, 1, N), lambda b: (b, 0, 0)),
        ),
        compiler_params=pltpu.CompilerParams(
            dimension_semantics=("parallel",),        # shard batch across v7x's 2 TCs
            vmem_limit_bytes=vmem_limit_bytes),
    )(lhs2, vflat,
      w1, b1.reshape(1, C_MID), w2, b2.reshape(C_MID, 1),
      w3.reshape(C_MID, 1), b3.reshape(C_MID, 1),
      jnp.asarray(w5_taps), b5_eff, coords)

    return out.reshape(B, 1, hp, wp)


def reference(E, v, params):
    """Pure-JAX mirror of the PyTorch forward (eval-mode BN)."""
    w1, b1, w2, b2, w3, b3, w5, b5, gamma, beta, rmean, rvar = params
    B, _, H, W = E.shape
    hp, wp = H // POOL, W // POOL
    v1 = jnp.einsum('oc,bchw->bohw', w1, v) + b1[None, :, None, None]
    v2 = jnp.einsum('oc,bchw->bohw', w2, v) + b2[None, :, None, None]
    Et = w3[None, :, None, None] * E + b3[None, :, None, None]
    Et = Et.reshape(B, C_MID, hp, POOL, wp, POOL).mean(axis=(3, 5))
    v1f = v1.reshape(B, C_MID, hp * wp).transpose(0, 2, 1)
    v2f = v2.reshape(B, C_MID, hp * wp)
    Etf = Et.reshape(B, C_MID, hp * wp)
    A = jnp.einsum('bnc,bcm->bnm', v1f, v2f)
    Pg = jnp.einsum('bcn,bnm->bcm', Etf, A).reshape(B, C_MID, hp, wp)
    z = lax.conv_general_dilated(Pg, w5, (1, 1), 'SAME',
                                 dimension_numbers=('NCHW', 'OIHW', 'NCHW'))
    z = z + b5[None, :, None, None]
    z = (z - rmean[None, :, None, None]) / jnp.sqrt(rvar[None, :, None, None] + 1e-5)
    z = z * gamma[None, :, None, None] + beta[None, :, None, None]
    return jnp.maximum(z, 0.0)


if __name__ == "__main__":
    key = jax.random.PRNGKey(0)
    ks = jax.random.split(key, 12)
    B, H, W = 2, 64, 128          # N = (H//8)*(W//8) = 128 -> lane-dense output block
    hp, wp = H // POOL, W // POOL

    E = jax.random.normal(ks[0], (B, 1, H, W), jnp.float32)
    v = jax.random.normal(ks[1], (B, C_IN, hp, wp), jnp.float32)

    # Deterministic synthetic parameters (shapes per the module __init__).
    w1 = 0.02 * jax.random.normal(ks[2], (C_MID, C_IN), jnp.float32)      # conv1 (32,256,1,1)
    b1 = 0.01 * jax.random.normal(ks[3], (C_MID,), jnp.float32)
    w2 = 0.02 * jax.random.normal(ks[4], (C_MID, C_IN), jnp.float32)      # conv2
    b2 = 0.01 * jax.random.normal(ks[5], (C_MID,), jnp.float32)
    w3 = 0.30 * jax.random.normal(ks[6], (C_MID,), jnp.float32)           # conv3 (32,1,1,1)
    b3 = 0.01 * jax.random.normal(ks[7], (C_MID,), jnp.float32)
    w5 = 0.10 * jax.random.normal(ks[8], (1, C_MID, 3, 3), jnp.float32)   # conv5[0]
    b5 = 0.01 * jax.random.normal(ks[9], (1,), jnp.float32)
    gamma = 1.0 + 0.1 * jax.random.normal(ks[10], (1,), jnp.float32)      # BatchNorm2d(1)
    beta = 0.05 * jax.random.normal(ks[11], (1,), jnp.float32)
    rmean = jnp.zeros((1,), jnp.float32)
    rvar = jnp.ones((1,), jnp.float32)

    params = (w1, b1, w2, b2, w3, b3, w5, b5, gamma, beta, rmean, rvar)

    ref = reference(E, v, params)

    # Default path: bf16 MXU operands on the length-N passes, f32 accumulation.
    out = jax.block_until_ready(global_qmg_pallas(E, v, params))
    assert out.shape == (B, 1, hp, wp)
    np.testing.assert_allclose(np.asarray(out), np.asarray(ref), rtol=2e-2, atol=2e-2)

    # Full-f32 path (tighter tolerance).
    out32 = jax.block_until_ready(
        global_qmg_pallas(E, v, params, matmul_dtype=jnp.float32))
    np.testing.assert_allclose(np.asarray(out32), np.asarray(ref), rtol=5e-3, atol=5e-3)

    print("KERNEL_OK")
</pallas_src>

<mosaic_0001>
module attributes {stable_mosaic.version = 11 : i64} {
  func.func @kernel(%arg0: i32, %arg1: memref<1x2x128xf32, #tpu.memory_space<vmem>>, %arg2: memref<1x256x128xbf16, #tpu.memory_space<vmem>>, %arg3: memref<32x256xf32, #tpu.memory_space<vmem>>, %arg4: memref<1x32xf32, #tpu.memory_space<vmem>>, %arg5: memref<32x256xf32, #tpu.memory_space<vmem>>, %arg6: memref<32x1xf32, #tpu.memory_space<vmem>>, %arg7: memref<32x1xf32, #tpu.memory_space<vmem>>, %arg8: memref<32x1xf32, #tpu.memory_space<vmem>>, %arg9: memref<9x32xf32, #tpu.memory_space<vmem>>, %arg10: memref<1x1xf32, #tpu.memory_space<vmem>>, %arg11: memref<2x128xi32, #tpu.memory_space<vmem>>, %arg12: memref<1x1x128xf32, #tpu.memory_space<vmem>>) attributes {dimension_semantics = [#tpu.dimension_semantics<parallel>], iteration_bounds = array<i64: 2>, scalar_prefetch = 0 : i64, scratch_operands = 0 : i64, tpu.core_type = #tpu.core_type<tc>, window_params = [{transform_indices = @transform_0, window_bounds = array<i64: 1, 2, 128>}, {transform_indices = @transform_1, window_bounds = array<i64: 1, 256, 128>}, {pipeline_mode = #tpu.pipeline_mode<synchronous>, transform_indices = @transform_2, window_bounds = array<i64: 32, 256>}, {pipeline_mode = #tpu.pipeline_mode<synchronous>, transform_indices = @transform_3, window_bounds = array<i64: 1, 32>}, {pipeline_mode = #tpu.pipeline_mode<synchronous>, transform_indices = @transform_4, window_bounds = array<i64: 32, 256>}, {pipeline_mode = #tpu.pipeline_mode<synchronous>, transform_indices = @transform_5, window_bounds = array<i64: 32, 1>}, {pipeline_mode = #tpu.pipeline_mode<synchronous>, transform_indices = @transform_6, window_bounds = array<i64: 32, 1>}, {pipeline_mode = #tpu.pipeline_mode<synchronous>, transform_indices = @transform_7, window_bounds = array<i64: 32, 1>}, {pipeline_mode = #tpu.pipeline_mode<synchronous>, transform_indices = @transform_8, window_bounds = array<i64: 9, 32>}, {pipeline_mode = #tpu.pipeline_mode<synchronous>, transform_indices = @transform_9, window_bounds = array<i64: 1, 1>}, {pipeline_mode = #tpu.pipeline_mode<synchronous>, transform_indices = @transform_10, window_bounds = array<i64: 2, 128>}, {transform_indices = @transform_11, window_bounds = array<i64: 1, 1, 128>}]} {
    %c0 = arith.constant 0 : index
    %c0_0 = arith.constant 0 : index
    %c0_1 = arith.constant 0 : index
    %0 = vector.load %arg2[%c0, %c0_0, %c0_1] : memref<1x256x128xbf16, #tpu.memory_space<vmem>>, vector<1x256x128xbf16>
    %1 = vector.shape_cast %0 : vector<1x256x128xbf16> to vector<256x128xbf16>
    %c0_2 = arith.constant 0 : index
    %c0_3 = arith.constant 0 : index
    %c0_4 = arith.constant 0 : index
    %2 = vector.load %arg1[%c0_2, %c0_3, %c0_4] : memref<1x2x128xf32, #tpu.memory_space<vmem>>, vector<1x2x128xf32>
    %3 = vector.shape_cast %2 : vector<1x2x128xf32> to vector<2x128xf32>
    %4 = vector.extract_strided_slice %3 {offsets = [0, 0], sizes = [1, 128], strides = [1, 1]} : vector<2x128xf32> to vector<1x128xf32>
    %cst = arith.constant dense<0.000000e+00> : vector<1xf32>
    %5 = vector.multi_reduction <add>, %4, %cst [1] : vector<1x128xf32> to vector<1xf32>
    %6 = vector.shape_cast %5 : vector<1xf32> to vector<1x1xf32>
    %7 = arith.truncf %3 : vector<2x128xf32> to vector<2x128xbf16>
    %cst_5 = arith.constant dense<0.000000e+00> : vector<2x256xf32>
    %8 = tpu.matmul %7, %1, %cst_5 {dimension_numbers = #tpu.dot_dimension_numbers<[1], [1], [0], [0], [0, 0, 1, 0], [], []>} : vector<2x128xbf16>, vector<256x128xbf16>, vector<2x256xf32> -> vector<2x256xf32>
    %9 = vector.extract_strided_slice %8 {offsets = [0, 0], sizes = [1, 256], strides = [1, 1]} : vector<2x256xf32> to vector<1x256xf32>
    %10 = vector.extract_strided_slice %8 {offsets = [1, 0], sizes = [1, 256], strides = [1, 1]} : vector<2x256xf32> to vector<1x256xf32>
    %c0_6 = arith.constant 0 : index
    %c0_7 = arith.constant 0 : index
    %11 = vector.load %arg3[%c0_6, %c0_7] : memref<32x256xf32, #tpu.memory_space<vmem>>, vector<32x256xf32>
    %cst_8 = arith.constant dense<0.000000e+00> : vector<1x32xf32>
    %12 = tpu.matmul %9, %11, %cst_8 {dimension_numbers = #tpu.dot_dimension_numbers<[1], [1], [0], [0], [0, 0, 1, 0], [], []>} : vector<1x256xf32>, vector<32x256xf32>, vector<1x32xf32> -> vector<1x32xf32>
    %c0_9 = arith.constant 0 : index
    %c0_10 = arith.constant 0 : index
    %13 = vector.load %arg4[%c0_9, %c0_10] : memref<1x32xf32, #tpu.memory_space<vmem>>, vector<1x32xf32>
    %14 = vector.broadcast %6 : vector<1x1xf32> to vector<1x32xf32>
    %15 = arith.mulf %14, %13 : vector<1x32xf32>
    %16 = arith.addf %12, %15 : vector<1x32xf32>
    %c0_11 = arith.constant 0 : index
    %c0_12 = arith.constant 0 : index
    %17 = vector.load %arg3[%c0_11, %c0_12] : memref<32x256xf32, #tpu.memory_space<vmem>>, vector<32x256xf32>
    %cst_13 = arith.constant dense<0.000000e+00> : vector<1x32xf32>
    %18 = tpu.matmul %10, %17, %cst_13 {dimension_numbers = #tpu.dot_dimension_numbers<[1], [1], [0], [0], [0, 0, 1, 0], [], []>} : vector<1x256xf32>, vector<32x256xf32>, vector<1x32xf32> -> vector<1x32xf32>
    %c0_14 = arith.constant 0 : index
    %c0_15 = arith.constant 0 : index
    %19 = vector.load %arg4[%c0_14, %c0_15] : memref<1x32xf32, #tpu.memory_space<vmem>>, vector<1x32xf32>
    %cst_16 = arith.constant 1.280000e+02 : f32
    %20 = vector.broadcast %cst_16 : f32 to vector<1x32xf32>
    %21 = arith.mulf %20, %19 : vector<1x32xf32>
    %22 = arith.addf %18, %21 : vector<1x32xf32>
    %c0_17 = arith.constant 0 : index
    %c0_18 = arith.constant 0 : index
    %23 = vector.load %arg7[%c0_17, %c0_18] : memref<32x1xf32, #tpu.memory_space<vmem>>, vector<32x1xf32>
    %24 = vector.broadcast %23 : vector<32x1xf32> to vector<32x32xf32>
    %25 = vector.broadcast %16 : vector<1x32xf32> to vector<32x32xf32>
    %26 = arith.mulf %24, %25 : vector<32x32xf32>
    %c0_19 = arith.constant 0 : index
    %c0_20 = arith.constant 0 : index
    %27 = vector.load %arg8[%c0_19, %c0_20] : memref<32x1xf32, #tpu.memory_space<vmem>>, vector<32x1xf32>
    %28 = vector.broadcast %27 : vector<32x1xf32> to vector<32x32xf32>
    %29 = vector.broadcast %22 : vector<1x32xf32> to vector<32x32xf32>
    %30 = arith.mulf %28, %29 : vector<32x32xf32>
    %31 = arith.addf %26, %30 : vector<32x32xf32>
    %c0_21 = arith.constant 0 : index
    %c0_22 = arith.constant 0 : index
    %32 = vector.load %arg9[%c0_21, %c0_22] : memref<9x32xf32, #tpu.memory_space<vmem>>, vector<9x32xf32>
    %cst_23 = arith.constant dense<0.000000e+00> : vector<9x32xf32>
    %33 = tpu.matmul %32, %31, %cst_23 {dimension_numbers = #tpu.dot_dimension_numbers<[1], [0], [0], [1], [0, 0, 1, 1], [], []>} : vector<9x32xf32>, vector<32x32xf32>, vector<9x32xf32> -> vector<9x32xf32>
    %c0_24 = arith.constant 0 : index
    %c0_25 = arith.constant 0 : index
    %34 = vector.load %arg5[%c0_24, %c0_25] : memref<32x256xf32, #tpu.memory_space<vmem>>, vector<32x256xf32>
    %cst_26 = arith.constant dense<0.000000e+00> : vector<9x256xf32>
    %35 = tpu.matmul %33, %34, %cst_26 {dimension_numbers = #tpu.dot_dimension_numbers<[1], [0], [0], [1], [0, 0, 1, 1], [], []>} : vector<9x32xf32>, vector<32x256xf32>, vector<9x256xf32> -> vector<9x256xf32>
    %c0_27 = arith.constant 0 : index
    %c0_28 = arith.constant 0 : index
    %36 = vector.load %arg6[%c0_27, %c0_28] : memref<32x1xf32, #tpu.memory_space<vmem>>, vector<32x1xf32>
    %cst_29 = arith.constant dense<0.000000e+00> : vector<9x1xf32>
    %37 = tpu.matmul %33, %36, %cst_29 {dimension_numbers = #tpu.dot_dimension_numbers<[1], [0], [0], [1], [0, 0, 1, 1], [], []>} : vector<9x32xf32>, vector<32x1xf32>, vector<9x1xf32> -> vector<9x1xf32>
    %38 = arith.truncf %35 : vector<9x256xf32> to vector<9x256xbf16>
    %cst_30 = arith.constant dense<0.000000e+00> : vector<9x128xf32>
    %39 = tpu.matmul %38, %1, %cst_30 {dimension_numbers = #tpu.dot_dimension_numbers<[1], [0], [0], [1], [0, 0, 1, 1], [], []>} : vector<9x256xbf16>, vector<256x128xbf16>, vector<9x128xf32> -> vector<9x128xf32>
    %40 = vector.broadcast %37 : vector<9x1xf32> to vector<9x128xf32>
    %41 = arith.addf %39, %40 : vector<9x128xf32>
    %42 = tpu.iota {dimensions = array<i32: 0>} : vector<9x128xi32>
    %c3_i32 = arith.constant 3 : i32
    %43 = vector.broadcast %c3_i32 : i32 to vector<9x128xi32>
    %44 = arith.cmpi slt, %42, %43 : vector<9x128xi32>
    %c6_i32 = arith.constant 6 : i32
    %45 = vector.broadcast %c6_i32 : i32 to vector<9x128xi32>
    %46 = arith.cmpi slt, %42, %45 : vector<9x128xi32>
    %c0_i32 = arith.constant 0 : i32
    %c1_i32 = arith.constant 1 : i32
    %47 = vector.broadcast %c0_i32 : i32 to vector<9x128xi32>
    %48 = vector.broadcast %c1_i32 : i32 to vector<9x128xi32>
    %49 = arith.select %46, %47, %48 : vector<9x128xi1>, vector<9x128xi32>
    %c-1_i32 = arith.constant -1 : i32
    %50 = vector.broadcast %c-1_i32 : i32 to vector<9x128xi32>
    %51 = arith.select %44, %50, %49 : vector<9x128xi1>, vector<9x128xi32>
    %c1_i32_31 = arith.constant 1 : i32
    %52 = vector.broadcast %c1_i32_31 : i32 to vector<9x128xi32>
    %53 = arith.addi %51, %52 : vector<9x128xi32>
    %c3_i32_32 = arith.constant 3 : i32
    %54 = vector.broadcast %c3_i32_32 : i32 to vector<9x128xi32>
    %55 = arith.muli %54, %53 : vector<9x128xi32>
    %56 = arith.subi %42, %55 : vector<9x128xi32>
    %c1_i32_33 = arith.constant 1 : i32
    %57 = vector.broadcast %c1_i32_33 : i32 to vector<9x128xi32>
    %58 = arith.subi %56, %57 : vector<9x128xi32>
    %c0_34 = arith.constant 0 : index
    %c0_35 = arith.constant 0 : index
    %59 = vector.load %arg11[%c0_34, %c0_35] : memref<2x128xi32, #tpu.memory_space<vmem>>, vector<1x128xi32>
    %60 = vector.shape_cast %59 : vector<1x128xi32> to vector<1x128xi32>
    %61 = vector.broadcast %60 : vector<1x128xi32> to vector<9x128xi32>
    %c1 = arith.constant 1 : index
    %c0_36 = arith.constant 0 : index
    %62 = vector.load %arg11[%c1, %c0_36] : memref<2x128xi32, #tpu.memory_space<vmem>>, vector<1x128xi32>
    %63 = vector.shape_cast %62 : vector<1x128xi32> to vector<1x128xi32>
    %64 = vector.broadcast %63 : vector<1x128xi32> to vector<9x128xi32>
    %65 = arith.subi %61, %51 : vector<9x128xi32>
    %66 = arith.subi %64, %58 : vector<9x128xi32>
    %c0_i32_37 = arith.constant 0 : i32
    %67 = vector.broadcast %c0_i32_37 : i32 to vector<9x128xi32>
    %68 = arith.cmpi sge, %65, %67 : vector<9x128xi32>
    %c8_i32 = arith.constant 8 : i32
    %69 = vector.broadcast %c8_i32 : i32 to vector<9x128xi32>
    %70 = arith.cmpi slt, %65, %69 : vector<9x128xi32>
    %71 = arith.andi %68, %70 : vector<9x128xi1>
    %c0_i32_38 = arith.constant 0 : i32
    %72 = vector.broadcast %c0_i32_38 : i32 to vector<9x128xi32>
    %73 = arith.cmpi sge, %66, %72 : vector<9x128xi32>
    %74 = arith.andi %71, %73 : vector<9x128xi1>
    %c16_i32 = arith.constant 16 : i32
    %75 = vector.broadcast %c16_i32 : i32 to vector<9x128xi32>
    %76 = arith.cmpi slt, %66, %75 : vector<9x128xi32>
    %77 = arith.andi %74, %76 : vector<9x128xi1>
    %cst_39 = arith.constant 0.000000e+00 : f32
    %78 = vector.broadcast %cst_39 : f32 to vector<9x128xf32>
    %79 = arith.select %77, %41, %78 : vector<9x128xi1>, vector<9x128xf32>
    %c0_40 = arith.constant 0 : index
    %c0_41 = arith.constant 0 : index
    %80 = vector.load %arg10[%c0_40, %c0_41] : memref<1x1xf32, #tpu.memory_space<vmem>>, vector<1x1xf32>
    %81 = vector.shape_cast %80 : vector<1x1xf32> to vector<1x1xf32>
    %82 = vector.broadcast %81 : vector<1x1xf32> to vector<1x128xf32>
    %83 = vector.extract_strided_slice %79 {offsets = [0, 0], sizes = [1, 128], strides = [1, 1]} : vector<9x128xf32> to vector<1x128xf32>
    %c17_i32 = arith.constant 17 : i32
    %84 = tpu.dynamic_rotate %83 by %c17_i32 dim 1 : vector<1x128xf32>, i32 -> vector<1x128xf32>
    %85 = arith.addf %82, %84 : vector<1x128xf32>
    %86 = vector.extract_strided_slice %79 {offsets = [1, 0], sizes = [1, 128], strides = [1, 1]} : vector<9x128xf32> to vector<1x128xf32>
    %c16_i32_42 = arith.constant 16 : i32
    %87 = tpu.dynamic_rotate %86 by %c16_i32_42 dim 1 : vector<1x128xf32>, i32 -> vector<1x128xf32>
    %88 = arith.addf %85, %87 : vector<1x128xf32>
    %89 = vector.extract_strided_slice %79 {offsets = [2, 0], sizes = [1, 128], strides = [1, 1]} : vector<9x128xf32> to vector<1x128xf32>
    %c15_i32 = arith.constant 15 : i32
    %90 = tpu.dynamic_rotate %89 by %c15_i32 dim 1 : vector<1x128xf32>, i32 -> vector<1x128xf32>
    %91 = arith.addf %88, %90 : vector<1x128xf32>
    %92 = vector.extract_strided_slice %79 {offsets = [3, 0], sizes = [1, 128], strides = [1, 1]} : vector<9x128xf32> to vector<1x128xf32>
    %c1_i32_43 = arith.constant 1 : i32
    %93 = tpu.dynamic_rotate %92 by %c1_i32_43 dim 1 : vector<1x128xf32>, i32 -> vector<1x128xf32>
    %94 = arith.addf %91, %93 : vector<1x128xf32>
    %95 = vector.extract_strided_slice %79 {offsets = [4, 0], sizes = [1, 128], strides = [1, 1]} : vector<9x128xf32> to vector<1x128xf32>
    %96 = arith.addf %94, %95 : vector<1x128xf32>
    %97 = vector.extract_strided_slice %79 {offsets = [5, 0], sizes = [1, 128], strides = [1, 1]} : vector<9x128xf32> to vector<1x128xf32>
    %c127_i32 = arith.constant 127 : i32
    %98 = tpu.dynamic_rotate %97 by %c127_i32 dim 1 : vector<1x128xf32>, i32 -> vector<1x128xf32>
    %99 = arith.addf %96, %98 : vector<1x128xf32>
    %100 = vector.extract_strided_slice %79 {offsets = [6, 0], sizes = [1, 128], strides = [1, 1]} : vector<9x128xf32> to vector<1x128xf32>
    %c113_i32 = arith.constant 113 : i32
    %101 = tpu.dynamic_rotate %100 by %c113_i32 dim 1 : vector<1x128xf32>, i32 -> vector<1x128xf32>
    %102 = arith.addf %99, %101 : vector<1x128xf32>
    %103 = vector.extract_strided_slice %79 {offsets = [7, 0], sizes = [1, 128], strides = [1, 1]} : vector<9x128xf32> to vector<1x128xf32>
    %c112_i32 = arith.constant 112 : i32
    %104 = tpu.dynamic_rotate %103 by %c112_i32 dim 1 : vector<1x128xf32>, i32 -> vector<1x128xf32>
    %105 = arith.addf %102, %104 : vector<1x128xf32>
    %106 = vector.extract_strided_slice %79 {offsets = [8, 0], sizes = [1, 128], strides = [1, 1]} : vector<9x128xf32> to vector<1x128xf32>
    %c111_i32 = arith.constant 111 : i32
    %107 = tpu.dynamic_rotate %106 by %c111_i32 dim 1 : vector<1x128xf32>, i32 -> vector<1x128xf32>
    %108 = arith.addf %105, %107 : vector<1x128xf32>
    %cst_44 = arith.constant 0.000000e+00 : f32
    %109 = vector.broadcast %cst_44 : f32 to vector<1x128xf32>
    %110 = arith.maximumf %108, %109 : vector<1x128xf32>
    %c0_45 = arith.constant 0 : index
    %c0_46 = arith.constant 0 : index
    %c0_47 = arith.constant 0 : index
    %111 = vector.load %arg12[%c0_45, %c0_46, %c0_47] : memref<1x1x128xf32, #tpu.memory_space<vmem>>, vector<1x1x128xf32>
    %112 = vector.shape_cast %111 : vector<1x1x128xf32> to vector<1x128xf32>
    %113 = vector.shape_cast %110 : vector<1x128xf32> to vector<1x1x128xf32>
    tpu.vector_store %arg12[%c0_45, %c0_46, %c0_47], %113 {strides = array<i32>} : memref<1x1x128xf32, #tpu.memory_space<vmem>>, vector<1x1x128xf32>,
    return
  }
  func.func @transform_0(%arg0: i32) -> (i32, i32, i32) {
    %c0_i32 = arith.constant 0 : i32
    %c0_i32_0 = arith.constant 0 : i32
    %c0_i32_1 = arith.constant 0 : i32
    return %arg0, %c0_i32, %c0_i32_0 : i32, i32, i32
  }
  func.func @transform_1(%arg0: i32) -> (i32, i32, i32) {
    %c0_i32 = arith.constant 0 : i32
    %c0_i32_0 = arith.constant 0 : i32
    %c0_i32_1 = arith.constant 0 : i32
    return %arg0, %c0_i32, %c0_i32_0 : i32, i32, i32
  }
  func.func @transform_2(%arg0: i32) -> (i32, i32) {
    %c0_i32 = arith.constant 0 : i32
    %c0_i32_0 = arith.constant 0 : i32
    %c0_i32_1 = arith.constant 0 : i32
    return %c0_i32, %c0_i32_0 : i32, i32
  }
  func.func @transform_3(%arg0: i32) -> (i32, i32) {
    %c0_i32 = arith.constant 0 : i32
    %c0_i32_0 = arith.constant 0 : i32
    %c0_i32_1 = arith.constant 0 : i32
    return %c0_i32, %c0_i32_0 : i32, i32
  }
  func.func @transform_4(%arg0: i32) -> (i32, i32) {
    %c0_i32 = arith.constant 0 : i32
    %c0_i32_0 = arith.constant 0 : i32
    %c0_i32_1 = arith.constant 0 : i32
    return %c0_i32, %c0_i32_0 : i32, i32
  }
  func.func @transform_5(%arg0: i32) -> (i32, i32) {
    %c0_i32 = arith.constant 0 : i32
    %c0_i32_0 = arith.constant 0 : i32
    %c0_i32_1 = arith.constant 0 : i32
    return %c0_i32, %c0_i32_0 : i32, i32
  }
  func.func @transform_6(%arg0: i32) -> (i32, i32) {
    %c0_i32 = arith.constant 0 : i32
    %c0_i32_0 = arith.constant 0 : i32
    %c0_i32_1 = arith.constant 0 : i32
    return %c0_i32, %c0_i32_0 : i32, i32
  }
  func.func @transform_7(%arg0: i32) -> (i32, i32) {
    %c0_i32 = arith.constant 0 : i32
    %c0_i32_0 = arith.constant 0 : i32
    %c0_i32_1 = arith.constant 0 : i32
    return %c0_i32, %c0_i32_0 : i32, i32
  }
  func.func @transform_8(%arg0: i32) -> (i32, i32) {
    %c0_i32 = arith.constant 0 : i32
    %c0_i32_0 = arith.constant 0 : i32
    %c0_i32_1 = arith.constant 0 : i32
    return %c0_i32, %c0_i32_0 : i32, i32
  }
  func.func @transform_9(%arg0: i32) -> (i32, i32) {
    %c0_i32 = arith.constant 0 : i32
    %c0_i32_0 = arith.constant 0 : i32
    %c0_i32_1 = arith.constant 0 : i32
    return %c0_i32, %c0_i32_0 : i32, i32
  }
  func.func @transform_10(%arg0: i32) -> (i32, i32) {
    %c0_i32 = arith.constant 0 : i32
    %c0_i32_0 = arith.constant 0 : i32
    %c0_i32_1 = arith.constant 0 : i32
    return %c0_i32, %c0_i32_0 : i32, i32
  }
  func.func @transform_11(%arg0: i32) -> (i32, i32, i32) {
    %c0_i32 = arith.constant 0 : i32
    %c0_i32_0 = arith.constant 0 : i32
    %c0_i32_1 = arith.constant 0 : i32
    return %arg0, %c0_i32, %c0_i32_0 : i32, i32, i32
  }
}

</mosaic_0001>

<bundles_post_ra>
// kernel: tpu_custom_call.1
= control target key start
LH: loop header
LB: loop body
LE: loop exit
PB: predicated region body
PF: predicated region fallthrough
CT: control target
= control target key end

     0   :  { %s1816_s0 = inlined_call_operand.vmem [shape: f32[2,2,128], index: 0, kind: input, shape index: {}]   ;;  %s1817_s1 = inlined_call_operand.hbm [shape: bf16[2,256,128], index: 1, kind: input, shape index: {}]   ;;  %s1818_s2 = inlined_call_operand.vmem [shape: f32[32,256], index: 2, kind: input, shape index: {}]   ;;  %s1819_s3 = inlined_call_operand.vmem [shape: f32[1,32], index: 3, kind: input, shape index: {}]   ;;  %s1820_s4 = inlined_call_operand.hbm [shape: f32[32,256], index: 4, kind: input, shape index: {}]   ;;  %s1821_s5 = inlined_call_operand.vmem [shape: f32[32,1], index: 5, kind: input, shape index: {}]   ;;  %s1822_s6 = inlined_call_operand.vmem [shape: f32[32,1], index: 6, kind: input, shape index: {}]   ;;  %s1823_s7 = inlined_call_operand.vmem [shape: f32[32,1], index: 7, kind: input, shape index: {}]   ;;  %s1824_s8 = inlined_call_operand.vmem [shape: f32[9,32], index: 8, kind: input, shape index: {}]   ;;  %s1825_s9 = inlined_call_operand.<no memory space> [shape: f32[1,1], index: 9, kind: input, shape index: {}]   ;;  %s1826_s10 = inlined_call_operand.vmem [shape: s32[2,128], index: 10, kind: input, shape index: {}]   ;;  %s1827_s11 = inlined_call_operand.hbm [shape: f32[2,1,128], index: 11, kind: output, shape index: {}]  }
   0x1   :  { %1831 = sst [smem:[#allocation15_spill]] %s1820_s4  ;;  %v16_v0 = vstv %s1825_s9 }
   0x2   :  { %17 = vst [vmem:[#allocation2] sm:$0x1] %v16_v0 }
   0x3   :  { %18 = vsyncpa [#allocation4], 0 }
   0x4   :  { %20 = vsyncpa [#allocation4 + $0x1], 0 }
   0x5   :  { %21 = vsyncpa [#allocation7], 0 }
   0x6   :  { %22 = vsyncpa [#allocation5], 0 }
   0x7   :  { %24 = vsyncpa [#allocation5 + $0x1], 0  ;;  %s1505_s19 = smov 0   ;;  %s1507_s20 = smov 0  }
   0x8   :  { %s1509_s21 = smov 0   ;;  %s1511_s22 = smov 0  }
   0x9 LB: > { %1832 = sst [smem:[#allocation12_spill]] %s1421_s21  ;;  %s1526_s9 = sadd.s32 4294967295, %s1425_s22   ;;  %s1425_s22 = sphi %s1511_s22, %s1842_s22   ;;  %s1421_s21 = sphi %s1509_s21, %s1844_s21   ;;  %s1417_s20 = sphi %s1507_s20, %s1846_s20   ;;  %s1413_s19 = sphi %s1505_s19, %s1845_s19  }
   0xa   : > { %s1113_s23 = sadd.s32 4294967294, %s1425_s22   ;;  %p76_p0 = scmp.ne.s32.totalorder %s1417_s20, %s1413_s19 }
   0xb   : > { %p77_p1 = scmp.eq.s32.totalorder %s1526_s9, 0  ;;  %p289_p2 = scmp.eq.s32.totalorder %s1526_s9, 1 }
   0xc   : > { %p295_p3 = scmp.eq.s32.totalorder %s1113_s23, 1  ;;  %p1114_p5 = scmp.ge.s32.totalorder %s1425_s22, 1 }
   0xd   : > { %p1535_p4 = por %p77_p1, %p76_p0  ;;  %p302_p7 = scmp.lt.s32.totalorder %s1425_s22, 3 }
   0xe   : > { %p1540_p6 = por %p295_p3, %p76_p0  ;;  %s1835_s4 = sld [smem:[#allocation15_spill]] }
   0xf   : > { %p1548_p8 = pnand %p1114_p5, %p302_p7  ;;  %s1427_s30 = smov [#allocation6]  }
  0x10   : > { %s321_s12 = sshll.u32 %s1427_s30, 4  ;;  %s1558_s13 = sadd.s32 1, %s1425_s22   ;;  %s322_s12 = int_to_ptr.vmem [resolvable:$true] %s321_s12 }
  0x11   : > { %p1227_p9 = pneg %p1548_p8  ;;  %1837 = sst [smem:[#allocation13_spill]] %s1558_s13 }
  0x12   : > { %s1428_s14 = smov 256   ;;  %s1429_s15 = smov 16  }
  0x13   : > { %p1228_p10 = pnand %p1227_p9, %p77_p1  ;;  %s60_s16 = ssub.s32 %s1425_s22, %s1558_s13 }
  0x14   : > { %s319_s28 = sshll.u32 %s1835_s4, 4  ;;  %s63_s17 = sadd.s32 1, %s1421_s21  ;;  %s320_s28 = int_to_ptr.hbm [resolvable:$true] %s319_s28 }
  0x15   : > { %1230 = dma.hbm_to_vmem [thread:$0]  (!%p1228_p10), %s320_s28, 1024, %s322_s12, [#allocation7], %s1428_s14, %s1428_s14, %s1429_s15  }
  0x16   : > { %p61_p12 = scmp.eq.s32.totalorder %s60_s16, 0  ;;  %p70_p13 = scmp.ne.s32.totalorder %s1421_s21, %s1417_s20 }
  0x17   : > { %p71_p0 = scmp.eq.s32.totalorder %s1425_s22, 0  ;;  %p1240_p3 = scmp.lt.s32.totalorder %s1425_s22, 2 }
  0x18   : > { %s1568_s18 = scalar_select %p61_p12, %s1421_s21, %s63_s17  }
  0x19   : > { %p72_p5 = por %p71_p0, %p70_p13  ;;  %p1572_p7 = por %p289_p2, %p70_p13 }
  0x1a   : > { %1838 = sst [smem:[#allocation14_spill]] %s1568_s18  ;;  %s360_s26 = sand.u32 1, %s1421_s21  }
  0x1b   : > { %s1202_s27 = sshll.u32 %s1425_s22, 7  ;;  %s1117_s30 = sshll.u32 %s360_s26, 7 }
  0x1c   : > { %s369_s12 = scalar_lea.hbm %s1817_s1, %s1202_s27  ;;  %s364_s15 = scalar_lea.vmem [#allocation3], %s1117_s30 }
  0x1d   : > { %s370_s14 = sshll.u32 %s369_s12, 4  ;;  %s372_s16 = sshll.u32 %s364_s15, 4  ;;  %s371_s14 = int_to_ptr.hbm [resolvable:$true] %s370_s14  ;;  %s373_s16 = int_to_ptr.vmem [resolvable:$true] %s372_s16 }
  0x1e   : > { %p1583_p9 = pnand %p1240_p3, %p72_p5  ;;  %s361_s18 = scalar_lea.sflag [#allocation4], %s360_s26 }
  0x1f   : > { %s1325_s13 = sshra.s32 %s371_s14, 4  ;;  %s1332_s30 = scalar_lea.hbm %s1817_s1, 256  ;;  %s1326_s13 = int_to_ptr.hbm [resolvable:$true] %s1325_s13 }
  0x20   : > { %s1327_s21 = scalar_lea.hbm %s1326_s13, 128  ;;  %p1329_p10 = pneg %p1583_p9 }
  0x21   : > { %p1328_p2 = scmp.ne.s32.totalorder %s1326_s13, %s1327_s21  ;;  %p1333_p0 = scmp.lt.s32.totalorder %s1326_s13, %s1817_s1 }
  0x22   : > { %p1334_p3 = scmp.lt.s32.totalorder %s1332_s30, %s1327_s21 }
  0x23   : > { %p1330_p12 = pnand %p1329_p10, %p1328_p2 }
  0x24   : > { %p1335_p5 = por %p1334_p3, %p1333_p0 }
  0x25   : > { %p1331_p13 = pneg %p1330_p12 }
  0x27   : > { %p1336_p11 = pnand %p1335_p5, %p1331_p13 }
  0x29   : > { %1339 = shalt.err (!%p1336_p11)
}
  0x2a   : > { %s1430_s26 = smov 64   ;;  %s1431_s15 = smov 4  }
  0x2b   : > { %1234 = dma.hbm_to_vmem [thread:$0]  (!%p1583_p9), %s371_s14, 2048, %s373_s16, %s361_s18, %s1430_s26, %s1430_s26, %s1431_s15  }
  0x2c   : > { %384 = sbr.rel (%p1548_p8) target bundleno = 944 (0x3b0), region = 64  ;;  %s1600_s4 = sand.u32 (!%p1548_p8), 1, %s1417_s20  }
  0x2d   : > { %s1121_s27 = sshll.u32 (!%p1548_p8), %s1600_s4, 7  ;;  %s387_s13 = scalar_lea.sflag (!%p1548_p8), [#allocation4], %s1600_s4 }
  0x2e   : > { %s1604_s21 = scalar_lea.vmem (!%p1548_p8), [#allocation3], %s1121_s27 }
  0x31   : > { %1400 = dma.done.wait (%p1535_p4), %s387_s13, 2048  }
  0x32   : > { %1402 = vsyncadd (%p1535_p4), %s387_s13, 4294965248 }
  0x33   : > { %1404 = dma.done.wait (%p77_p1), [#allocation7], 1024  }
  0x34   : > { %1406 = vsyncadd (%p77_p1), [#allocation7], 4294966272  ;;  %v1615_v1 = vld [vmem:[%s1604_s21 + $0x38] sm:$0xff]  ;;  %v1623_v3 = vld [vmem:[%s1604_s21 + $0x30] sm:$0xff]  ;;  %p438_p1 = scmp.lt.s32.totalorder %s1526_s9, 1  ;;  %v1432_v14 = vmov 0   ;;  %s1021_s15 = scalar_lea.hbm %s1827_s11, %s1526_s9 }
  0x35   : > { %v1618_v2 = vld [vmem:[%s1604_s21 + $0x78] sm:$0xff]  ;;  %576 = vmatpush.bf16.xpose.msra.mxu0 %v1615_v1  ;;  %v1626_v4 = vld [vmem:[%s1604_s21 + $0x70] sm:$0xff]  ;;  %v1631_v5 = vld [vmem:[%s1604_s21 + $0x28] sm:$0xff]  ;;  %1291 = vset.pattern.permute.xlu1 %v1432_v14  ;;  %vm475_vm0 = vcmask 1040384   ;;  %vm763_vm1 = vcmask 261120   ;;  %s1436_s18 = smov 16  }
  0x36   : > { %589 = vmatpush.bf16.xpose.msra.mxu1 %v1618_v2  ;;  %v1634_v6 = vld [vmem:[%s1604_s21 + $0x68] sm:$0xff]  ;;  %v1640_v7 = vld [vmem:[%s1604_s21 + $0x20] sm:$0xff]  ;;  %s439_s24 = scalar_select %p438_p1, %s1526_s9, 1  ;;  %v1649_v9 = vld [vmem:[%s1604_s21 + $0x18] sm:$0xff]  ;;  %1292 = vset.pattern.permute.xlu2 %v1432_v14 }
  0x37   : > { %v1643_v8 = vld [vmem:[%s1604_s21 + $0x60] sm:$0xff]  ;;  %v1652_v10 = vld [vmem:[%s1604_s21 + $0x58] sm:$0xff]  ;;  %v608_v12 = vld [vmem:[%s1818_s2 + $0x30] sm:$0xff]  ;;  %1290 = vset.pattern.permute.xlu0 %v1432_v14  ;;  %s1437_s14 = smov 1   ;;  %s1439_s17 = smov 127  }
  0x38   : > { %s1123_s29 = sshll.u32 %s439_s24, 1  ;;  %v731_v11 = vld [vmem:[%s1823_s7 + $0x18] sm:$0xff]  ;;  %671 = vmatpush.xpose.msra.mxu2 %v608_v12  ;;  %v606_v19 = vld [vmem:[%s1818_s2 + $0x20] sm:$0xff]  ;;  %v607_v20 = vld [vmem:[%s1818_s2 + $0x28] sm:$0xff]  ;;  %s1440_s30 = smov 112  }
  0x39   : > { %s441_s16 = scalar_lea.vmem %s1816_s0, %s1123_s29  ;;  %v609_v15 = vld [vmem:[%s1818_s2 + $0x38] sm:$0xff]  ;;  %749 = vperm.xlu1 %1291, %v731_v11   ;;  %v701_v21 = vld [vmem:[%s1822_s6 + $0x10] sm:$0xff]  ;;  %v602_v26 = vld [vmem:[%s1818_s2] sm:$0xff]  ;;  %s1435_s29 = smov 15  }
  0x3a   : > { %v474_v13 = vld [vmem:[%s441_s16] sm:$0x3]  ;;  %691 = vmatpush.xpose.msra.mxu3 %v609_v15  ;;  %v1669_v17 = vld [vmem:[%s1604_s21 + $0x10] sm:$0xff]  ;;  %v1692_v24 = vld [vmem:[%s1604_s21 + $0x8] sm:$0xff]  ;;  %s1438_s16 = smov 113   ;;  %s1441_s28 = smov 111  }
  0x3b   : > { %v476_v16 = vsel %vm475_vm0, %v474_v13, 0.0  ;;  %v1672_v18 = vld [vmem:[%s1604_s21 + $0x50] sm:$0xff]  ;;  %v1695_v25 = vld [vmem:[%s1604_s21 + $0x48] sm:$0xff]  ;;  %v1706_v28 = vld [vmem:[%s1604_s21] sm:$0xff]  ;;  %v479_v30 = vpack.c.bf16 %v474_v13, %v474_v13  ;;  %s437_s27 = scalar_lea.vmem [#allocation8], %s1600_s4  ;;  %s1025_s24 = sshll.u32 %s1021_s15, 4  ;;  %s1026_s24 = int_to_ptr.hbm [resolvable:$true] %s1025_s24 }
  0x3c   : > { %477 = vadd.xlane.f32.xlu0 %v476_v16  ;;  %672 = vmatpush.xpose.msra.mxu2 %v606_v19  ;;  %v604_v22 = vld [vmem:[%s1818_s2 + $0x10] sm:$0xff]  ;;  %v605_v23 = vld [vmem:[%s1818_s2 + $0x18] sm:$0xff]  ;;  %v729_v27 = vld [vmem:[%s1823_s7 + $0x8] sm:$0xff]  ;;  %s1023_s13 = sshll.u32 %s437_s27, 4  ;;  %s1024_s13 = int_to_ptr.vmem [resolvable:$true] %s1023_s13 }
  0x3d   : > { %577 = vmatpush.bf16.xpose.msra.mxu0 %v1623_v3  ;;  %v1709_v29 = vld [vmem:[%s1604_s21 + $0x40] sm:$0xff]  ;;  %v702_v33 = vld [vmem:[%s1822_s6 + $0x18] sm:$0xff]  ;;  %v730_v34 = vld [vmem:[%s1823_s7 + $0x10] sm:$0xff]  ;;  %s1434_s21 = smov 17  }
  0x3e   : > { %590 = vmatpush.bf16.xpose.msra.mxu1 %v1626_v4  ;;  %692 = vmatpush.xpose.msra.mxu3 %v607_v20  ;;  %v603_v31 = vld [vmem:[%s1818_s2 + $0x8] sm:$0xff]  ;;  %v728_v32 = vld [vmem:[%s1823_s7] sm:$0xff]  ;;  %v799_v50 = vld [vmem:[#allocation6 + $0x30] sm:$0xff] }
  0x3f   : > { %744 = vperm.xlu2 %1292, %v730_v34   ;;  %v700_v35 = vld [vmem:[%s1822_s6 + $0x8] sm:$0xff]  ;;  %v699_v36 = vld [vmem:[%s1822_s6] sm:$0xff]  ;;  %v795_v54 = vld [vmem:[#allocation6 + $0x10] sm:$0xff] }
  0x40   : > { %673 = vmatpush.xpose.msra.mxu2 %v604_v22  ;;  %v610_v45 = vld [vmem:[%s1819_s3] sm:$0x1]  ;;  %v797_v52 = vld [vmem:[#allocation6 + $0x20] sm:$0xff]  ;;  %v798_v34 = vld [vmem:[#allocation6 + $0x28] sm:$0xff] }
  0x41   : > { %715 = vperm.xlu1 %1291, %v701_v21   ;;  %v652_v55 = vmul.f32 128.0, %v610_v45 }
  0x42   : > { %693 = vmatpush.xpose.msra.mxu3 %v605_v23 }
  0x44   : > { %674 = vmatpush.xpose.msra.mxu2 %v602_v26 }
  0x45   : > { %578 = vmatpush.bf16.xpose.msra.mxu0 %v1631_v5 }
  0x46   : > { %591 = vmatpush.bf16.xpose.msra.mxu1 %v1634_v6  ;;  %694 = vmatpush.xpose.msra.mxu3 %v603_v31 }
  0x47   : > { %710 = vperm.xlu2 %1292, %v700_v35   ;;  %v796_v35 = vld [vmem:[#allocation6 + $0x18] sm:$0xff] }
  0x49   : > { %739 = vperm.xlu1 %1291, %v729_v27  }
  0x4a   : > { %819 = vmatpush.msrb.mxu3 %v799_v50 }
  0x4c   : > { %820 = vmatpush.msrb.mxu3 %v797_v52 }
  0x4d   : > { %579 = vmatpush.bf16.xpose.msra.mxu0 %v1640_v7 }
  0x4e   : > { %592 = vmatpush.bf16.xpose.msra.mxu1 %v1643_v8  ;;  %821 = vmatpush.msrb.mxu3 %v795_v54 }
  0x4f   : > { %705 = vperm.xlu2 %1292, %v699_v36   ;;  %v762_v36 = vld [vmem:[%s1824_s8 + $0x8] sm:$0x1] }
  0x50   : > { %720 = vperm.xlu0 %1290, %v702_v33   ;;  %v800_v33 = vld [vmem:[#allocation6 + $0x38] sm:$0xff] }
  0x51   : > { %734 = vperm.xlu1 %1291, %v728_v32   ;;  %v761_v32 = vld [vmem:[%s1824_s8] sm:$0xff] }
  0x55   : > { %580 = vmatpush.bf16.xpose.msra.mxu0 %v1649_v9 }
  0x56   : > { %593 = vmatpush.bf16.xpose.msra.mxu1 %v1652_v10 }
  0x5d   : > { %581 = vmatpush.bf16.xpose.msra.mxu0 %v1669_v17 }
  0x5e   : > { %594 = vmatpush.bf16.xpose.msra.mxu1 %v1672_v18 }
  0x65   : > { %582 = vmatpush.bf16.xpose.msra.mxu0 %v1692_v24 }
  0x66   : > { %595 = vmatpush.bf16.xpose.msra.mxu1 %v1695_v25 }
  0x6d   : > { %583 = vmatpush.bf16.xpose.msra.mxu0 %v1706_v28 }
  0x6e   : > { %596 = vmatpush.bf16.xpose.msra.mxu1 %v1709_v29 }
  0x74   : > { %584 = vmatmul.bf16.vlgmr.msra.gmra.mxu0 %v479_v30 }
  0x75   : > { %624 = vmatpush.xpose.msrb.mxu0 %v608_v12  ;;  %597 = vmatmul.bf16.vlgmr.msra.gmra.mxu1 %v479_v30 }
  0x76   : > { %644 = vmatpush.xpose.msrb.mxu1 %v609_v15 }
  0x79   : > { %625 = vmatpush.xpose.msrb.mxu0 %v606_v19 }
  0x7a   : > { %645 = vmatpush.xpose.msrb.mxu1 %v607_v20 }
  0x7d   : > { %626 = vmatpush.xpose.msrb.mxu0 %v604_v22 }
  0x7e   : > { %646 = vmatpush.xpose.msrb.mxu1 %v605_v23 }
  0x81   : > { %627 = vmatpush.xpose.msrb.mxu0 %v602_v26 }
  0x82   : > { %647 = vmatpush.xpose.msrb.mxu1 %v603_v31 }
  0x99   : > { %v745_v47 = vpop.permute.xlu2 %744 }
  0xa1   : > { %v711_v61 = vpop.permute.xlu2 %710 }
  0xa9   : > { %v706_v26 = vpop.permute.xlu2 %705 }
  0xab   : > { %v750_v43 = vpop.permute.xlu1 %749 }
  0xaf   : > { %v478_v46 = vpop.xlane.xlu0 %477 }
  0xb0   : > { %v611_v49 = vmul.f32 %v610_v45, %v478_v46  ;;  %v1293_v46 = vld [vmem:[%s1826_s10] ss:$0 sm:$0xff] }
  0xb3   : > { %v716_v44 = vpop.permute.xlu1 %715 }
  0xbb   : > { %v740_v56 = vpop.permute.xlu1 %739 }
  0xc2   : > { %v721_v0 = vpop.permute.xlu0 %720 }
  0xc3   : > { %v735_v20 = vpop.permute.xlu1 %734 }
  0xf1   : > { %v585_v37 = vpop.f32.mrf.mxu0 }
  0xf2   : > { %v598_v38 = vpop.f32.mrf.mxu1  ;;  %628 = vmatmul.f32.vlgmr.msrb.gmra.mxu0 %v585_v37  ;;  %v655_v39 = vrot.slane %v585_v37, 1  ;;  %v793_v37 = vld [vmem:[#allocation6] sm:$0xff] }
  0xf3   : > { %648 = vmatmul.f32.vlgmr.msrb.gmra.mxu1 %v598_v38  ;;  %v656_v40 = vrot.slane %v598_v38, 1  ;;  %v794_v38 = vld [vmem:[#allocation6 + $0x8] sm:$0xff]  ;;  %822 = vmatpush.msrb.mxu3 %v793_v37 }
  0xf4   : > { %675 = vmatmul.f32.vlgmr.msra.gmra.mxu2 %v655_v39  ;;  %v856_v39 = vld [vmem:[%s1821_s5 + $0x18] sm:$0xff] }
  0xf5   : > { %695 = vmatmul.f32.vlgmr.msra.gmra.mxu3 %v656_v40  ;;  %v855_v40 = vld [vmem:[%s1821_s5 + $0x10] sm:$0xff] }
  0xf6   : > { %869 = vmatpush.msra.mxu3 %v856_v39 }
  0xf8   : > { %870 = vmatpush.msra.mxu3 %v855_v40 }
  0xf9   : > { %v587_v41 = vpop.f32.mrf.mxu0 }
  0xfa   : > { %v600_v42 = vpop.f32.mrf.mxu1  ;;  %v854_v41 = vld [vmem:[%s1821_s5 + $0x8] sm:$0xff] }
  0xfb   : > { %871 = vmatpush.msra.mxu3 %v854_v41 }
 0x16f   : > { %v629_v48 = vpop.f32.mrf.mxu0 }
 0x170   : > { %v630_v51 = vadd.f32 %v629_v48, %v611_v49  ;;  %v649_v53 = vpop.f32.mrf.mxu1  ;;  %v1294_v48 = vld [vmem:[%s1826_s10 + $0x1] ss:$0 sm:$0xff] }
 0x172   : > { %v650_v57 = vadd.f32 %v649_v53, %v630_v51 }
 0x174   : > { %v723_v62 = vperm.slane %v650_v57, 0 }
 0x176   : > { %v727_v12 = vmul.f32 %v723_v62, %v721_v0  ;;  %v726_v16 = vmul.f32 %v723_v62, %v716_v44  ;;  %v725_v22 = vmul.f32 %v723_v62, %v711_v61  ;;  %v724_v27 = vmul.f32 %v723_v62, %v706_v26 }
 0x177   : > { %v676_v58 = vpop.f32.mrf.mxu2  ;;  %v1199_v62 = vadd.s32 4294967295, %v1293_v46 }
 0x178   : > { %v696_v59 = vpop.f32.mrf.mxu3  ;;  %v677_v60 = vadd.f32 %v676_v58, %v652_v55 }
 0x179   : > { %vm948_vm11 = vcmp.ge.s32.totalorder %v1199_v62, 0  ;;  %vm950_vm12 = vcmp.lt.s32.totalorder %v1199_v62, 8 }
 0x17a   : > { %v697_v63 = vadd.f32 %v696_v59, %v677_v60  ;;  %vm952_vm13 = vmand %vm948_vm11, %vm950_vm12 }
 0x17c   : > { %v752_v11 = vperm.slane %v697_v63, 0 }
 0x17e   : > { %v756_v13 = vmul.f32 %v752_v11, %v750_v43  ;;  %v755_v14 = vmul.f32 %v752_v11, %v745_v47  ;;  %v754_v19 = vmul.f32 %v752_v11, %v740_v56  ;;  %v753_v23 = vmul.f32 %v752_v11, %v735_v20 }
 0x180   : > { %v760_v15 = vadd.f32 %v756_v13, %v727_v12  ;;  %v759_v21 = vadd.f32 %v755_v14, %v726_v16  ;;  %v758_v30 = vadd.f32 %v754_v19, %v725_v22  ;;  %v757_v31 = vadd.f32 %v753_v23, %v724_v27 }
 0x182   : > { %782 = vmatpush.msrb.mxu2 %v760_v15 }
 0x184   : > { %783 = vmatpush.msrb.mxu2 %v759_v21 }
 0x186   : > { %784 = vmatpush.msrb.mxu2 %v758_v30 }
 0x188   : > { %785 = vmatpush.msrb.mxu2 %v757_v31 }
 0x189   : > { %1188 = vmatmul.msk.f32.vlgmr.msrb.gmra.mxu2 %vm763_vm1, %v761_v32 }
 0x18a   : > { %842 = vmatpush.msra.mxu2 %v800_v33 }
 0x18c   : > { %843 = vmatpush.msra.mxu2 %v798_v34 }
 0x18e   : > { %844 = vmatpush.msra.mxu2 %v796_v35 }
 0x190   : > { %845 = vmatpush.msra.mxu2 %v794_v38 }
 0x191   : > { %1189 = vmatmul.msk.f32.gmra.mxu2 %vm763_vm1, %v762_v36 }
 0x192   : > { %892 = vmatpush.bf16.msrb.mxu2 %v1615_v1  ;;  %v853_v1 = vld [vmem:[%s1821_s5] sm:$0xff] }
 0x193   : > { %872 = vmatpush.msra.mxu3 %v853_v1 }
 0x196   : > { %893 = vmatpush.bf16.msrb.mxu2 %v1623_v3 }
 0x19a   : > { %894 = vmatpush.bf16.msrb.mxu2 %v1631_v5 }
 0x19e   : > { %895 = vmatpush.bf16.msrb.mxu2 %v1640_v7 }
 0x1a2   : > { %896 = vmatpush.bf16.msrb.mxu2 %v1649_v9 }
 0x1a6   : > { %897 = vmatpush.bf16.msrb.mxu2 %v1669_v17 }
 0x1aa   : > { %898 = vmatpush.bf16.msrb.mxu2 %v1692_v24  ;;  %v963_v24 = vld [vmem:[#allocation2] sm:$0x1] }
 0x1ae   : > { %899 = vmatpush.bf16.msrb.mxu2 %v1706_v28 }
 0x20c   : > { %v787_v3 = vpop.f32.mrf.mxu2 }
 0x20d   : > { %1190 = vmatmul.msk.f32.vlgmr.msrb.gmra.mxu3 %vm763_vm1, %v787_v3  ;;  %1192 = vmatmul.msk.f32.vlgmr.msra.gmra.mxu2 %vm763_vm1, %v787_v3 }
 0x20e   : > { %906 = vmatpush.bf16.msrb.mxu3 %v1618_v2 }
 0x212   : > { %907 = vmatpush.bf16.msrb.mxu3 %v1626_v4 }
 0x214   : > { %v790_v5 = vpop.f32.mrf.mxu2 }
 0x215   : > { %1191 = vmatmul.msk.f32.gmra.mxu3 %vm763_vm1, %v790_v5  ;;  %1193 = vmatmul.msk.f32.gmra.mxu2 %vm763_vm1, %v790_v5 }
 0x216   : > { %908 = vmatpush.bf16.msrb.mxu3 %v1634_v6 }
 0x21a   : > { %909 = vmatpush.bf16.msrb.mxu3 %v1643_v8 }
 0x21d   : > { %1194 = vmatmul.msk.f32.vlgmr.msra.gmra.mxu3 %vm763_vm1, %v787_v3 }
 0x21e   : > { %910 = vmatpush.bf16.msrb.mxu3 %v1652_v10 }
 0x222   : > { %911 = vmatpush.bf16.msrb.mxu3 %v1672_v18  ;;  %v920_v18 = vlaneseq }
 0x224   : > { %v921_v28 = vshrl.u32 %v920_v18, 7 }
 0x225   : > { %1195 = vmatmul.msk.f32.gmra.mxu3 %vm763_vm1, %v790_v5 }
 0x226   : > { %912 = vmatpush.bf16.msrb.mxu3 %v1695_v25  ;;  %vm925_vm2 = vcmp.lt.s32.totalorder %v921_v28, 6  ;;  %vm923_vm3 = vcmp.lt.s32.totalorder %v921_v28, 3  ;;  %v1433_v25 = vmov 1   ;;  %v922_v51 = vadd.s32 8, %v921_v28 }
 0x228   : > { %v1196_v56 = vadd.s32 4294967290, %v922_v51 }
 0x22a   : > { %913 = vmatpush.bf16.msrb.mxu3 %v1709_v29  ;;  %v927_v29 = vsel %vm925_vm2, 0, %v1433_v25  ;;  %v1198_v61 = vadd.s32 4294967295, %v1196_v56 }
 0x22b   : > { %v929_v42 = vsel %vm923_vm3, 4294967295, %v927_v29 }
 0x22c   : > { %v931_v43 = vadd.s32 1, %v929_v42  ;;  %v943_v49 = vsub.s32 %v1293_v46, %v929_v42  ;;  %v946_v63 = vsub.s32 %v1294_v48, %v1198_v61 }
 0x22e   : > { %v933_v44 = vmul.u32 3, %v931_v43  ;;  %vm947_vm4 = vcmp.ge.s32.totalorder %v943_v49, 0  ;;  %vm949_vm5 = vcmp.lt.s32.totalorder %v943_v49, 8  ;;  %vm954_vm14 = vcmp.ge.s32.totalorder %v946_v63, 0 }
 0x22f   : > { %vm951_vm6 = vmand %vm947_vm4, %vm949_vm5  ;;  %vm958_vm0 = vcmp.lt.s32.totalorder %v946_v63, 16 }
 0x230   : > { %v935_v45 = vsub.s32 %v921_v28, %v933_v44  ;;  %vm956_vm15 = vmand %vm952_vm13, %vm954_vm14 }
 0x231   : > { %vm960_vm1 = vmand %vm956_vm15, %vm958_vm0 }
 0x232   : > { %v1197_v47 = vadd.s32 4294967295, %v935_v45 }
 0x234   : > { %v945_v50 = vsub.s32 %v1294_v48, %v1197_v47 }
 0x236   : > { %vm953_vm7 = vcmp.ge.s32.totalorder %v945_v50, 0  ;;  %vm957_vm9 = vcmp.lt.s32.totalorder %v945_v50, 16 }
 0x237   : > { %vm955_vm8 = vmand %vm951_vm6, %vm953_vm7 }
 0x238   : > { %vm959_vm10 = vmand %vm955_vm8, %vm957_vm9 }
 0x290   : > { %v824_v2 = vpop.f32.mrf.mxu3  ;;  %v847_v4 = vpop.f32.mrf.mxu2 }
 0x298   : > { %v827_v7 = vpop.f32.mrf.mxu3  ;;  %v850_v9 = vpop.f32.mrf.mxu2 }
 0x299   : > { %v880_v17 = vpack.c.bf16 %v827_v7, %v824_v2  ;;  %v881_v6 = vpack.c.bf16 %v850_v9, %v847_v4 }
 0x29b   : > { %900 = vmatmul.bf16.vlgmr.msrb.gmra.mxu2 %v880_v17  ;;  %914 = vmatmul.bf16.vlgmr.msrb.gmra.mxu3 %v881_v6 }
 0x2a0   : > { %v874_v8 = vpop.f32.mrf.mxu3 }
 0x2a1   : > { %884 = vperm.xlu2 %1292, %v874_v8  }
 0x2a8   : > { %v877_v10 = vpop.f32.mrf.mxu3 }
 0x2a9   : > { %966 = vperm.xlu2 %1292, %v963_v24   ;;  %889 = vperm.xlu1 %1291, %v877_v10  }
 0x2fb   : > { %v885_v52 = vpop.permute.xlu2 %884 }
 0x303   : > { %v967_v22 = vpop.permute.xlu2 %966 }
 0x304   : > { %v969_v26 = vperm.slane %v967_v22, 0 }
 0x31b   : > { %v890_v12 = vpop.permute.xlu1 %889 }
 0x31e   : > { %v901_v53 = vpop.f32.mrf.mxu2  ;;  %v915_v55 = vpop.f32.mrf.mxu3 }
 0x31f   : > { %v902_v54 = vadd.f32 %v901_v53, %v885_v52 }
 0x321   : > { %v916_v57 = vadd.f32 %v915_v55, %v902_v54 }
 0x323   : > { %v961_v58 = vsel %vm959_vm10, %v916_v57, 0.0 }
 0x324   : > { %970 = vrot.lane.b32.xlu1 %v961_v58, %s1434_s21  ;;  %v979_v59 = vrot.slane %v961_v58, 2  ;;  %v974_v60 = vrot.slane %v961_v58, 1  ;;  %v984_v11 = vrot.slane %v961_v58, 3  ;;  %v997_v13 = vrot.slane %v961_v58, 6  ;;  %s1013_s21 = scalar_lea.sflag [#allocation5], %s1600_s4 }
 0x325   : > { %v992_v14 = vrot.slane %v961_v58, 5  ;;  %v1002_v20 = vrot.slane %v961_v58, 7  ;;  %v989_v36 = vrot.slane %v961_v58, 4 }
 0x326   : > { %981 = vrot.lane.b32.xlu0 %v979_v59, %s1435_s29  ;;  %976 = vrot.lane.b32.xlu2 %v974_v60, %s1436_s18  ;;  %v903_v0 = vpop.f32.mrf.mxu2  ;;  %v917_v16 = vpop.f32.mrf.mxu3  ;;  %s1369_s29 = sshra.s32 %s1026_s24, 4  ;;  %s1370_s29 = int_to_ptr.hbm [resolvable:$true] %s1369_s29 }
 0x327   : > { %v904_v15 = vadd.f32 %v903_v0, %v890_v12  ;;  %s1371_s18 = scalar_lea.hbm %s1370_s29, 1  ;;  %p1376_p9 = scmp.lt.s32.totalorder %s1370_s29, %s1827_s11 }
 0x328   : > { %p1372_p4 = scmp.ne.s32.totalorder %s1370_s29, %s1371_s18 }
 0x329   : > { %v918_v19 = vadd.f32 %v917_v16, %v904_v15 }
 0x32a   : > { %p1373_p8 = pnand %p1372_p4, %p1572_p7 }
 0x32b   : > { %v962_v21 = vsel %vm960_vm1, %v918_v19, 0.0 }
 0x32c   : > { %986 = vrot.lane.b32.xlu1 %v984_v11, %s1437_s14  ;;  %p1374_p11 = pneg %p1373_p8 }
 0x32e   : > { %999 = vrot.lane.b32.xlu0 %v997_v13, %s1438_s16  ;;  %994 = vrot.lane.b32.xlu2 %v992_v14, %s1439_s17  ;;  %s1375_s16 = scalar_lea.hbm %s1827_s11, 2 }
 0x32f   : > { %p1377_p2 = scmp.lt.s32.totalorder %s1375_s16, %s1371_s18 }
 0x331   : > { %p1378_p10 = por %p1377_p2, %p1376_p9 }
 0x333   : > { %p1379_p12 = pnand %p1378_p10, %p1374_p11 }
 0x334   : > { %1004 = vrot.lane.b32.xlu1 %v1002_v20, %s1440_s30 }
 0x336   : > { %1007 = vrot.lane.b32.xlu2 %v962_v21, %s1441_s28 }
 0x380   : > { %v977_v23 = vpop.permute.xlu2 %976 }
 0x388   : > { %v995_v34 = vpop.permute.xlu2 %994 }
 0x390   : > { %v1008_v5 = vpop.permute.xlu2 %1007 }
 0x396   : > { %v971_v27 = vpop.permute.xlu1 %970 }
 0x397   : > { %v972_v30 = vadd.f32 %v971_v27, %v969_v26 }
 0x398   : > { %v982_v32 = vpop.permute.xlu0 %981 }
 0x399   : > { %v978_v31 = vadd.f32 %v977_v23, %v972_v30 }
 0x39b   : > { %v983_v33 = vadd.f32 %v982_v32, %v978_v31 }
 0x39e   : > { %v987_v35 = vpop.permute.xlu1 %986 }
 0x39f   : > { %v988_v37 = vadd.f32 %v987_v35, %v983_v33 }
 0x3a0   : > { %v1000_v40 = vpop.permute.xlu0 %999 }
 0x3a1   : > { %v991_v38 = vadd.f32 %v989_v36, %v988_v37 }
 0x3a3   : > { %v996_v39 = vadd.f32 %v995_v34, %v991_v38 }
 0x3a5   : > { %v1001_v41 = vadd.f32 %v1000_v40, %v996_v39 }
 0x3a6   : > { %v1005_v1 = vpop.permute.xlu1 %1004 }
 0x3a7   : > { %v1006_v3 = vadd.f32 %v1005_v1, %v1001_v41 }
 0x3a9   : > { %v1009_v2 = vadd.f32 %v1008_v5, %v1006_v3 }
 0x3ab   : > { %v1010_v4 = vmax.f32 %v1009_v2, 0.0 }
 0x3ad   : > { %1011 = vst [vmem:[%s437_s27] sm:$0x1] %v1010_v4 }
 0x3ae   : > { %1382 = shalt.err (!%p1379_p12)
}
 0x3af   : > { %1225 = dma.vmem_to_hbm [thread:$0]  (%p1572_p7), %s1024_s13, 16, %s1026_s24, %s1013_s21  }
 0x3b0 PF: > { %s1037_s4 = sand.u32 1, %s1413_s19   ;;  %p1841_p13 = scmp.ge.s32.totalorder %s1425_s22, 2 }
 0x3b1   : > { %s1038_s28 = scalar_lea.sflag [#allocation5], %s1037_s4 }
 0x3b2   : > { %p1236_p0 = pnand %p1841_p13, %p1540_p6 }
 0x3b4   : > { %p1237_p3 = pneg %p1236_p0 }
 0x3b6   : > { %1408 = dma.done.wait (%p1237_p3), %s1038_s28, 16  }
 0x3b7   : > { %1410 = vsyncadd (%p1237_p3), %s1038_s28, 4294967280  ;;  %s1842_s22 = sld [smem:[#allocation13_spill]]  ;;  %s1845_s19 = smov %s1417_s20 }
 0x3b8   : > { %s1843_s12 = sld [smem:[#allocation12_spill]] }
 0x3b9   : > { %s1844_s21 = sld [smem:[#allocation14_spill]] }
 0x3bd   : > { %p27_p5 = scmp.ge.s32.totalorder %s1842_s22, 4  }
 0x3be   : > { %s1846_s20 = smov %s1843_s12 }
 0x3bf   :  { %29 = sbr.rel (!%p27_p5) target bundleno = 9 (0x9), region = 116 }
 0x3c4   :  { %1043 = vsyncpa [#allocation4], 1 }
 0x3c5   :  { %1045 = vsyncpa [#allocation4 + $0x1], 1 }
 0x3c6   :  { %1046 = vsyncpa [#allocation7], 1 }
 0x3c7   :  { %1047 = vsyncpa [#allocation5], 1 }
 0x3c8   :  { %1049 = vsyncpa [#allocation5 + $0x1], 1 }

</bundles_post_ra>
